<compile_context>
chip_gen: v7x
topology: tpu7x:2x2x1
jax: 0.10.0
libtpu: 0.0.40
codegen_flags: <defaults>
</compile_context>

<pallas_src>
import functools

import jax
import jax.numpy as jnp
from jax.experimental import pallas as pl
from jax.experimental.pallas import tpu as pltpu

_LANES = 128
_SUBLANES = 8


def _dice_partial_kernel(x_ref, t_ref, inter_ref, denom_ref, *,
                         rows_total, tiles_per_split):
    """Grid = (split, row_tile).

    Axis 0 is 'parallel' (splits -> TensorCores on v7x); axis 1 walks the row
    tiles of this split ('arbitrary' reduction axis).  The output blocks (one
    per split) stay resident in VMEM across axis 1 and act as accumulators:
    per-sample, per-lane partial sums of x*t and x+t.
    """
    c = pl.program_id(0)
    k = pl.program_id(1)

    @pl.when(k == 0)
    def _init():
        inter_ref[...] = jnp.zeros_like(inter_ref)
        denom_ref[...] = jnp.zeros_like(denom_ref)

    tile_rows = x_ref.shape[1]
    # Global row offset of this tile.  Rows past the real extent are masked to
    # zero; this also zeroes the contribution of a clamped / re-read tile when
    # the total tile count does not divide evenly across the splits.
    off = (c * tiles_per_split + k) * tile_rows
    row_ids = jax.lax.broadcasted_iota(jnp.int32, x_ref.shape, dimension=1)
    valid = row_ids < (rows_total - off)

    x = jnp.where(valid, x_ref[...].astype(jnp.float32), 0.0)
    t = jnp.where(valid, t_ref[...].astype(jnp.float32), 0.0)

    inter_ref[...] += jnp.sum(x * t, axis=1)   # (N, 128) lane partials
    denom_ref[...] += jnp.sum(x + t, axis=1)   # (N, 128) lane partials


def _choose_tile_rows(n, rows, target_block_bytes=2 * 1024 * 1024):
    """Pick a row-tile so one f32 input block is ~target_block_bytes."""
    bytes_per_row = n * _LANES * 4
    tile = (target_block_bytes // bytes_per_row) // _SUBLANES * _SUBLANES
    tile = max(tile, _SUBLANES)
    rows_padded = pl.cdiv(rows, _SUBLANES) * _SUBLANES
    return min(tile, rows_padded)


@jax.jit
def binary_dice_loss(inputs, targets):
    """Pallas implementation of BinaryDiceLoss.forward (smooth = 1)."""
    n = targets.shape[0]
    x = inputs.reshape(n, -1)
    t = targets.reshape(n, -1)
    d = x.shape[1]

    # Lane-dense layout: (N, D//128, 128).  Zero-pad only to the next lane
    # boundary if needed (zeros do not change any of the sums).
    d128 = pl.cdiv(d, _LANES) * _LANES
    if d128 != d:
        x = jnp.pad(x, ((0, 0), (0, d128 - d)))
        t = jnp.pad(t, ((0, 0), (0, d128 - d)))
    rows = d128 // _LANES
    x = x.reshape(n, rows, _LANES)
    t = t.reshape(n, rows, _LANES)

    tile_rows = _choose_tile_rows(n, rows)
    total_tiles = pl.cdiv(rows, tile_rows)
    n_splits = min(2, total_tiles)                 # v7x: one split per TC
    tiles_per_split = pl.cdiv(total_tiles, n_splits)

    block_bytes = n * tile_rows * _LANES * 4       # one f32 input block
    # 2 inputs x 2 buffers + resident outputs + margin; stays under every
    # generation's scoped-VMEM ceiling (v5e default 16 MiB, v7x phys 64 MiB).
    vmem_limit = min(max(4 * block_bytes + (8 << 20), 16 << 20), 48 << 20)

    def in_map(c, k):
        # Clamp an out-of-range tile index back to the last valid tile; the
        # kernel's row mask zeroes its contribution.
        return (0, jnp.minimum(c * tiles_per_split + k, total_tiles - 1), 0)

    kernel = functools.partial(
        _dice_partial_kernel,
        rows_total=rows,
        tiles_per_split=tiles_per_split,
    )

    inter_part, denom_part = pl.pallas_call(
        kernel,
        out_shape=(
            jax.ShapeDtypeStruct((n_splits, n, _LANES), jnp.float32),
            jax.ShapeDtypeStruct((n_splits, n, _LANES), jnp.float32),
        ),
        grid_spec=pltpu.PrefetchScalarGridSpec(
            num_scalar_prefetch=0,
            grid=(n_splits, tiles_per_split),
            in_specs=[
                pl.BlockSpec((n, tile_rows, _LANES), in_map),
                pl.BlockSpec((n, tile_rows, _LANES), in_map),
            ],
            out_specs=(
                pl.BlockSpec((None, n, _LANES), lambda c, k: (c, 0, 0)),
                pl.BlockSpec((None, n, _LANES), lambda c, k: (c, 0, 0)),
            ),
        ),
        compiler_params=pltpu.CompilerParams(
            dimension_semantics=("parallel", "arbitrary"),
            vmem_limit_bytes=vmem_limit,
        ),
    )(x, t)

    # Tiny finalize in plain JAX (a handful of scalars per sample).
    smooth = jnp.float32(1.0)
    inter = jnp.sum(inter_part, axis=(0, 2))       # (N,)
    denom = jnp.sum(denom_part, axis=(0, 2))       # (N,)
    dice = (2.0 * inter + smooth) / (denom + smooth)
    return 1.0 - jnp.sum(dice) / jnp.float32(n)


def binary_dice_loss_ref(inputs, targets):
    """Pure-JAX reference mirroring the PyTorch module."""
    n = targets.shape[0]
    smooth = 1.0
    x = inputs.reshape(n, -1)
    t = targets.reshape(n, -1)
    inter = jnp.sum(x * t, axis=1)
    dice = (2.0 * inter + smooth) / (jnp.sum(x, axis=1) + jnp.sum(t, axis=1) + smooth)
    return 1.0 - jnp.sum(dice) / n


if __name__ == "__main__":
    key = jax.random.PRNGKey(0)
    k1, k2 = jax.random.split(key)

    # Small NCHW shapes: batch=2, channels=4, spatial=16x16
    x = jax.nn.sigmoid(jax.random.normal(k1, (2, 4, 16, 16), dtype=jnp.float32))
    y = (jax.random.uniform(k2, (2, 4, 16, 16)) > 0.5).astype(jnp.float32)

    loss = binary_dice_loss(x, y)
    jax.block_until_ready(loss)

    ref = binary_dice_loss_ref(x, y)
    assert jnp.allclose(loss, ref, atol=1e-5, rtol=1e-5), (loss, ref)

    print("KERNEL_OK")
</pallas_src>

<mosaic_0001>
module attributes {stable_mosaic.version = 11 : i64} {
  func.func @_dice_partial_kernel(%arg0: i32, %arg1: i32, %arg2: memref<2x8x128xf32, #tpu.memory_space<vmem>>, %arg3: memref<2x8x128xf32, #tpu.memory_space<vmem>>, %arg4: memref<1x2x128xf32, #tpu.memory_space<vmem>>, %arg5: memref<1x2x128xf32, #tpu.memory_space<vmem>>) attributes {dimension_semantics = [#tpu.dimension_semantics<parallel>, #tpu.dimension_semantics<arbitrary>], iteration_bounds = array<i64: 1, 1>, scalar_prefetch = 0 : i64, scratch_operands = 0 : i64, tpu.core_type = #tpu.core_type<tc>, window_params = [{transform_indices = @transform_0, window_bounds = array<i64: 2, 8, 128>}, {transform_indices = @transform_1, window_bounds = array<i64: 2, 8, 128>}, {transform_indices = @transform_2, window_bounds = array<i64: 1, 2, 128>}, {transform_indices = @transform_3, window_bounds = array<i64: 1, 2, 128>}]} {
    %c0_i32 = arith.constant 0 : i32
    %0 = arith.cmpi eq, %arg1, %c0_i32 : i32
    %1 = arith.extui %0 : i1 to i32
    %c0_i32_0 = arith.constant 0 : i32
    %2 = arith.cmpi ne, %1, %c0_i32_0 : i32
    scf.if %2 {
      %cst_22 = arith.constant 0.000000e+00 : f32
      %32 = vector.broadcast %cst_22 : f32 to vector<2x128xf32>
      %c0_23 = arith.constant 0 : index
      %c0_24 = arith.constant 0 : index
      %c0_25 = arith.constant 0 : index
      %33 = vector.load %arg4[%c0_23, %c0_24, %c0_25] : memref<1x2x128xf32, #tpu.memory_space<vmem>>, vector<1x2x128xf32>
      %34 = vector.shape_cast %33 : vector<1x2x128xf32> to vector<2x128xf32>
      %35 = vector.shape_cast %32 : vector<2x128xf32> to vector<1x2x128xf32>
      tpu.vector_store %arg4[%c0_23, %c0_24, %c0_25], %35 {strides = array<i32>} : memref<1x2x128xf32, #tpu.memory_space<vmem>>, vector<1x2x128xf32>,
      %cst_26 = arith.constant 0.000000e+00 : f32
      %36 = vector.broadcast %cst_26 : f32 to vector<2x128xf32>
      %c0_27 = arith.constant 0 : index
      %c0_28 = arith.constant 0 : index
      %c0_29 = arith.constant 0 : index
      %37 = vector.load %arg5[%c0_27, %c0_28, %c0_29] : memref<1x2x128xf32, #tpu.memory_space<vmem>>, vector<1x2x128xf32>
      %38 = vector.shape_cast %37 : vector<1x2x128xf32> to vector<2x128xf32>
      %39 = vector.shape_cast %36 : vector<2x128xf32> to vector<1x2x128xf32>
      tpu.vector_store %arg5[%c0_27, %c0_28, %c0_29], %39 {strides = array<i32>} : memref<1x2x128xf32, #tpu.memory_space<vmem>>, vector<1x2x128xf32>,
    } else {
    }
    %c1_i32 = arith.constant 1 : i32
    %3 = arith.muli %arg0, %c1_i32 : i32
    %4 = arith.addi %3, %arg1 : i32
    %c8_i32 = arith.constant 8 : i32
    %5 = arith.muli %4, %c8_i32 : i32
    %6 = tpu.iota {dimensions = array<i32: 1>} : vector<2x8x128xi32>
    %c8_i32_1 = arith.constant 8 : i32
    %7 = arith.subi %c8_i32_1, %5 : i32
    %8 = vector.broadcast %7 : i32 to vector<2x8x128xi32>
    %9 = arith.cmpi slt, %6, %8 : vector<2x8x128xi32>
    %c0 = arith.constant 0 : index
    %c0_2 = arith.constant 0 : index
    %c0_3 = arith.constant 0 : index
    %10 = vector.load %arg2[%c0, %c0_2, %c0_3] : memref<2x8x128xf32, #tpu.memory_space<vmem>>, vector<2x8x128xf32>
    %cst = arith.constant 0.000000e+00 : f32
    %11 = vector.broadcast %cst : f32 to vector<2x8x128xf32>
    %12 = arith.select %9, %10, %11 : vector<2x8x128xi1>, vector<2x8x128xf32>
    %c0_4 = arith.constant 0 : index
    %c0_5 = arith.constant 0 : index
    %c0_6 = arith.constant 0 : index
    %13 = vector.load %arg3[%c0_4, %c0_5, %c0_6] : memref<2x8x128xf32, #tpu.memory_space<vmem>>, vector<2x8x128xf32>
    %cst_7 = arith.constant 0.000000e+00 : f32
    %14 = vector.broadcast %cst_7 : f32 to vector<2x8x128xf32>
    %15 = arith.select %9, %13, %14 : vector<2x8x128xi1>, vector<2x8x128xf32>
    %c0_8 = arith.constant 0 : index
    %c0_9 = arith.constant 0 : index
    %c0_10 = arith.constant 0 : index
    %16 = vector.load %arg4[%c0_8, %c0_9, %c0_10] : memref<1x2x128xf32, #tpu.memory_space<vmem>>, vector<1x2x128xf32>
    %17 = vector.shape_cast %16 : vector<1x2x128xf32> to vector<2x128xf32>
    %18 = arith.mulf %12, %15 : vector<2x8x128xf32>
    %cst_11 = arith.constant dense<0.000000e+00> : vector<2x128xf32>
    %19 = vector.multi_reduction <add>, %18, %cst_11 [1] : vector<2x8x128xf32> to vector<2x128xf32>
    %20 = arith.addf %17, %19 : vector<2x128xf32>
    %c0_12 = arith.constant 0 : index
    %c0_13 = arith.constant 0 : index
    %c0_14 = arith.constant 0 : index
    %21 = vector.load %arg4[%c0_12, %c0_13, %c0_14] : memref<1x2x128xf32, #tpu.memory_space<vmem>>, vector<1x2x128xf32>
    %22 = vector.shape_cast %21 : vector<1x2x128xf32> to vector<2x128xf32>
    %23 = vector.shape_cast %20 : vector<2x128xf32> to vector<1x2x128xf32>
    tpu.vector_store %arg4[%c0_12, %c0_13, %c0_14], %23 {strides = array<i32>} : memref<1x2x128xf32, #tpu.memory_space<vmem>>, vector<1x2x128xf32>,
    %c0_15 = arith.constant 0 : index
    %c0_16 = arith.constant 0 : index
    %c0_17 = arith.constant 0 : index
    %24 = vector.load %arg5[%c0_15, %c0_16, %c0_17] : memref<1x2x128xf32, #tpu.memory_space<vmem>>, vector<1x2x128xf32>
    %25 = vector.shape_cast %24 : vector<1x2x128xf32> to vector<2x128xf32>
    %26 = arith.addf %12, %15 : vector<2x8x128xf32>
    %cst_18 = arith.constant dense<0.000000e+00> : vector<2x128xf32>
    %27 = vector.multi_reduction <add>, %26, %cst_18 [1] : vector<2x8x128xf32> to vector<2x128xf32>
    %28 = arith.addf %25, %27 : vector<2x128xf32>
    %c0_19 = arith.constant 0 : index
    %c0_20 = arith.constant 0 : index
    %c0_21 = arith.constant 0 : index
    %29 = vector.load %arg5[%c0_19, %c0_20, %c0_21] : memref<1x2x128xf32, #tpu.memory_space<vmem>>, vector<1x2x128xf32>
    %30 = vector.shape_cast %29 : vector<1x2x128xf32> to vector<2x128xf32>
    %31 = vector.shape_cast %28 : vector<2x128xf32> to vector<1x2x128xf32>
    tpu.vector_store %arg5[%c0_19, %c0_20, %c0_21], %31 {strides = array<i32>} : memref<1x2x128xf32, #tpu.memory_space<vmem>>, vector<1x2x128xf32>,
    return
  }
  func.func @transform_0(%arg0: i32, %arg1: i32) -> (i32, i32, i32) {
    %c1_i32 = arith.constant 1 : i32
    %0 = arith.muli %arg0, %c1_i32 : i32
    %1 = arith.addi %0, %arg1 : i32
    %c0_i32 = arith.constant 0 : i32
    %2 = arith.minsi %1, %c0_i32 : i32
    %c0_i32_0 = arith.constant 0 : i32
    %c0_i32_1 = arith.constant 0 : i32
    %c0_i32_2 = arith.constant 0 : i32
    return %c0_i32_0, %2, %c0_i32_1 : i32, i32, i32
  }
  func.func @transform_1(%arg0: i32, %arg1: i32) -> (i32, i32, i32) {
    %c1_i32 = arith.constant 1 : i32
    %0 = arith.muli %arg0, %c1_i32 : i32
    %1 = arith.addi %0, %arg1 : i32
    %c0_i32 = arith.constant 0 : i32
    %2 = arith.minsi %1, %c0_i32 : i32
    %c0_i32_0 = arith.constant 0 : i32
    %c0_i32_1 = arith.constant 0 : i32
    %c0_i32_2 = arith.constant 0 : i32
    return %c0_i32_0, %2, %c0_i32_1 : i32, i32, i32
  }
  func.func @transform_2(%arg0: i32, %arg1: i32) -> (i32, i32, i32) {
    %c0_i32 = arith.constant 0 : i32
    %c0_i32_0 = arith.constant 0 : i32
    %c0_i32_1 = arith.constant 0 : i32
    return %arg0, %c0_i32, %c0_i32_0 : i32, i32, i32
  }
  func.func @transform_3(%arg0: i32, %arg1: i32) -> (i32, i32, i32) {
    %c0_i32 = arith.constant 0 : i32
    %c0_i32_0 = arith.constant 0 : i32
    %c0_i32_1 = arith.constant 0 : i32
    return %arg0, %c0_i32, %c0_i32_0 : i32, i32, i32
  }
}

</mosaic_0001>

<bundles_post_ra>
// kernel: binary_dice_loss.1
= control target key start
LH: loop header
LB: loop body
LE: loop exit
PB: predicated region body
PF: predicated region fallthrough
CT: control target
= control target key end

     0   :  { %v152_v0 = vmov 0.0   ;;  %vm105_vm0 = vcmask 1041409   ;;  %s203_s2 = inlined_call_operand.vmem [shape: f32[1,2,128], index: 2, kind: output, shape index: {0}]   ;;  %s204_s3 = inlined_call_operand.vmem [shape: f32[1,2,128], index: 3, kind: output, shape index: {1}]   ;;  %s205_s0 = inlined_call_operand.vmem [shape: f32[2,8,128], index: 0, kind: input, shape index: {}]   ;;  %s206_s1 = inlined_call_operand.vmem [shape: f32[2,8,128], index: 1, kind: input, shape index: {}]  }
   0x1   :  { %71 = vst [vmem:[%s203_s2] sm:$0x3] %v152_v0  ;;  %72 = vst [vmem:[%s204_s3] sm:$0x3] %v152_v0  ;;  %v80_v1 = vld [vmem:[%s205_s0] sm:$0xff]  ;;  %v81_v2 = vld [vmem:[%s205_s0 + $0x8] sm:$0xff] }
   0x2   :  { %v84_v3 = vld [vmem:[%s206_s1] sm:$0xff]  ;;  %v85_v4 = vld [vmem:[%s206_s1 + $0x8] sm:$0xff] }
   0x3   :  { %v89_v5 = vmul.f32 %v84_v3, %v80_v1  ;;  %v111_v6 = vadd.f32 %v84_v3, %v80_v1  ;;  %v90_v7 = vmul.f32 %v85_v4, %v81_v2  ;;  %v112_v8 = vadd.f32 %v85_v4, %v81_v2 }
   0x5   :  { %v91_v9 = vrot.slane %v89_v5, 4  ;;  %v113_v10 = vrot.slane %v111_v6, 4  ;;  %v97_v11 = vrot.slane %v90_v7, 4  ;;  %v119_v12 = vrot.slane %v112_v8, 4 }
   0x7   :  { %v92_v13 = vadd.f32 %v91_v9, %v89_v5  ;;  %v114_v14 = vadd.f32 %v113_v10, %v111_v6  ;;  %v98_v15 = vadd.f32 %v97_v11, %v90_v7  ;;  %v120_v16 = vadd.f32 %v119_v12, %v112_v8 }
   0x8   :  { %v88_v31 = vld [vmem:[%s203_s2] sm:$0x3] }
   0x9   :  { %v93_v17 = vrot.slane %v92_v13, 2  ;;  %v115_v18 = vrot.slane %v114_v14, 2  ;;  %v99_v19 = vrot.slane %v98_v15, 2  ;;  %v121_v20 = vrot.slane %v120_v16, 2  ;;  %v110_v33 = vld [vmem:[%s204_s3] sm:$0x3] }
   0xb   :  { %v94_v21 = vadd.f32 %v93_v17, %v92_v13  ;;  %v116_v22 = vadd.f32 %v115_v18, %v114_v14  ;;  %v100_v23 = vadd.f32 %v99_v19, %v98_v15  ;;  %v122_v24 = vadd.f32 %v121_v20, %v120_v16 }
   0xd   :  { %v95_v25 = vrot.slane %v94_v21, 1  ;;  %v117_v26 = vrot.slane %v116_v22, 1  ;;  %v101_v27 = vrot.slane %v100_v23, 1  ;;  %v123_v28 = vrot.slane %v122_v24, 1 }
   0xf   :  { %v96_v29 = vadd.f32 %v95_v25, %v94_v21  ;;  %v118_v30 = vadd.f32 %v117_v26, %v116_v22  ;;  %v102_v32 = vadd.f32 %v101_v27, %v100_v23  ;;  %v124_v34 = vadd.f32 %v123_v28, %v122_v24 }
  0x11   :  { %v106_v35 = vsel %vm105_vm0, %v102_v32, %v96_v29  ;;  %v127_v36 = vsel %vm105_vm0, %v124_v34, %v118_v30 }
  0x12   :  { %v108_v37 = vadd.f32 %v106_v35, %v88_v31  ;;  %v129_v38 = vadd.f32 %v127_v36, %v110_v33 }
  0x14   :  { %109 = vst [vmem:[%s203_s2] sm:$0x3] %v108_v37  ;;  %130 = vst [vmem:[%s204_s3] sm:$0x3] %v129_v38 }

</bundles_post_ra>
